<compile_context>
chip_gen: v6e
topology: v6e:2x2x1
jax: 0.10.0
libtpu: 0.0.40
codegen_flags: <defaults>
</compile_context>

<pallas_src>
import jax
import jax.numpy as jnp
from jax import lax
from jax.experimental import pallas as pl
from jax.experimental.pallas import tpu as pltpu

_LANE = 128
_SUBLANE = 8
_INV_SQRT2 = 0.7071067811865476


def _round_up(n, m):
    return ((n + m - 1) // m) * m


def _classifier_kernel(x_ref, w1_ref, b1_ref, w2_ref, b2_ref, o_ref):
    # fc1: [TB, D] @ [D, H] + [1, H]   (f32 accumulate on the MXU)
    h = jnp.dot(x_ref[...], w1_ref[...], preferred_element_type=jnp.float32)
    h = h + b1_ref[...]

    # Exact (erf-based) GELU, matching torch.nn.GELU() default.
    g = 0.5 * h * (1.0 + lax.erf(h * jnp.float32(_INV_SQRT2)))

    # fc2: [TB, H] @ [H, C_pad] + [1, C_pad]; C_pad is a multiple of 128 so
    # the store below is a lane-dense, unmasked vst.
    y = jnp.dot(g, w2_ref[...], preferred_element_type=jnp.float32)
    o_ref[...] = (y + b2_ref[...]).astype(o_ref.dtype)


def prepare_classifier_params(w1, b1, w2, b2):
    """One-time param prep: bias row reshape + lane-padding of the head.

    w1: [dim, hidden], b1: [hidden], w2: [hidden, n_class], b2: [n_class].
    Returns a dict consumed by `classifier_forward`.
    """
    H = w1.shape[1]
    C = w2.shape[1]
    c_pad = _round_up(C, _LANE)
    w2p = jnp.pad(w2, ((0, 0), (0, c_pad - C)))
    b2p = jnp.pad(b2, (0, c_pad - C)).reshape(1, c_pad)
    return {
        "w1": w1,
        "b1": b1.reshape(1, H),
        "w2": w2p,
        "b2": b2p,
        "n_class": C,
    }


def classifier_forward(x, params, *, tb=128):
    """x: [B, dim] -> [B, n_class]."""
    w1, b1, w2, b2 = params["w1"], params["b1"], params["w2"], params["b2"]
    n_class = params["n_class"]

    B, D = x.shape
    H = w1.shape[1]
    c_pad = w2.shape[1]

    # Batch tile: multiple of 8 sublanes; don't over-tile tiny batches.
    tb_eff = min(tb, _round_up(B, _SUBLANE))
    b_pad = _round_up(B, tb_eff)
    if b_pad != B:
        x = jnp.pad(x, ((0, b_pad - B), (0, 0)))

    grid = (b_pad // tb_eff,)

    out_padded = pl.pallas_call(
        _classifier_kernel,
        out_shape=jax.ShapeDtypeStruct((b_pad, c_pad), x.dtype),
        grid_spec=pl.GridSpec(
            grid=grid,
            in_specs=[
                # Batch tile streams with the grid (pipelined).
                pl.BlockSpec((tb_eff, D), lambda i: (i, 0)),
                # Weights / biases: constant index -> stay VMEM-resident.
                pl.BlockSpec((D, H), lambda i: (0, 0)),
                pl.BlockSpec((1, H), lambda i: (0, 0)),
                pl.BlockSpec((H, c_pad), lambda i: (0, 0)),
                pl.BlockSpec((1, c_pad), lambda i: (0, 0)),
            ],
            out_specs=pl.BlockSpec((tb_eff, c_pad), lambda i: (i, 0)),
        ),
        compiler_params=pltpu.CompilerParams(
            # Independent batch tiles: shard across TensorCores on v7x.
            dimension_semantics=("parallel",),
        ),
    )(x, w1, b1, w2, b2)

    return out_padded[:B, :n_class]


def init_classifier_params(key, dim, hidden_dim, n_class, dtype=jnp.float32):
    """Deterministic parameter init mirroring nn.Linear shapes (stored transposed)."""
    k1, k2, k3, k4 = jax.random.split(key, 4)
    bound1 = 1.0 / jnp.sqrt(dim)
    bound2 = 1.0 / jnp.sqrt(hidden_dim)
    w1 = jax.random.uniform(k1, (dim, hidden_dim), dtype, -bound1, bound1)
    b1 = jax.random.uniform(k2, (hidden_dim,), dtype, -bound1, bound1)
    w2 = jax.random.uniform(k3, (hidden_dim, n_class), dtype, -bound2, bound2)
    b2 = jax.random.uniform(k4, (n_class,), dtype, -bound2, bound2)
    return w1, b1, w2, b2


if __name__ == "__main__":
    # Small shapes consistent with Classifier(dim=32, hidden_dim=64, n_class=4);
    # batch=256 so the batch grid (TB=128 -> 2 tiles) actually exercises the
    # pipelined / parallel path.
    batch, dim, hidden_dim, n_class = 256, 32, 64, 4

    key = jax.random.PRNGKey(0)
    kx, kp = jax.random.split(key)
    x = jax.random.normal(kx, (batch, dim), jnp.float32)
    w1, b1, w2, b2 = init_classifier_params(kp, dim, hidden_dim, n_class)
    params = prepare_classifier_params(w1, b1, w2, b2)

    out = classifier_forward(x, params, tb=128)
    out = jax.block_until_ready(out)

    # Reference check in plain JAX (same exact-GELU semantics as torch.nn.GELU()).
    h_ref = x @ w1 + b1
    g_ref = 0.5 * h_ref * (1.0 + lax.erf(h_ref / jnp.sqrt(2.0)))
    ref = g_ref @ w2 + b2
    assert out.shape == (batch, n_class)
    assert jnp.allclose(out, ref, atol=1e-5, rtol=1e-5)

    print("KERNEL_OK")
</pallas_src>

<mosaic_0001>
module attributes {stable_mosaic.version = 11 : i64} {
  func.func @_classifier_kernel(%arg0: i32, %arg1: memref<128x32xf32, #tpu.memory_space<vmem>>, %arg2: memref<32x64xf32, #tpu.memory_space<vmem>>, %arg3: memref<1x64xf32, #tpu.memory_space<vmem>>, %arg4: memref<64x128xf32, #tpu.memory_space<vmem>>, %arg5: memref<1x128xf32, #tpu.memory_space<vmem>>, %arg6: memref<128x128xf32, #tpu.memory_space<vmem>>) attributes {dimension_semantics = [#tpu.dimension_semantics<parallel>], iteration_bounds = array<i64: 2>, scalar_prefetch = 0 : i64, scratch_operands = 0 : i64, tpu.core_type = #tpu.core_type<tc>, window_params = [{transform_indices = @transform_0, window_bounds = array<i64: 128, 32>}, {pipeline_mode = #tpu.pipeline_mode<synchronous>, transform_indices = @transform_1, window_bounds = array<i64: 32, 64>}, {pipeline_mode = #tpu.pipeline_mode<synchronous>, transform_indices = @transform_2, window_bounds = array<i64: 1, 64>}, {pipeline_mode = #tpu.pipeline_mode<synchronous>, transform_indices = @transform_3, window_bounds = array<i64: 64, 128>}, {pipeline_mode = #tpu.pipeline_mode<synchronous>, transform_indices = @transform_4, window_bounds = array<i64: 1, 128>}, {transform_indices = @transform_5, window_bounds = array<i64: 128, 128>}]} {
    %c0 = arith.constant 0 : index
    %c0_0 = arith.constant 0 : index
    %0 = vector.load %arg1[%c0, %c0_0] : memref<128x32xf32, #tpu.memory_space<vmem>>, vector<128x32xf32>
    %c0_1 = arith.constant 0 : index
    %c0_2 = arith.constant 0 : index
    %1 = vector.load %arg2[%c0_1, %c0_2] : memref<32x64xf32, #tpu.memory_space<vmem>>, vector<32x64xf32>
    %cst = arith.constant dense<0.000000e+00> : vector<128x64xf32>
    %2 = tpu.matmul %0, %1, %cst {dimension_numbers = #tpu.dot_dimension_numbers<[1], [0], [0], [1], [0, 0, 1, 1], [], []>} : vector<128x32xf32>, vector<32x64xf32>, vector<128x64xf32> -> vector<128x64xf32>
    %c0_3 = arith.constant 0 : index
    %c0_4 = arith.constant 0 : index
    %3 = vector.load %arg3[%c0_3, %c0_4] : memref<1x64xf32, #tpu.memory_space<vmem>>, vector<1x64xf32>
    %4 = vector.broadcast %3 : vector<1x64xf32> to vector<128x64xf32>
    %5 = arith.addf %2, %4 : vector<128x64xf32>
    %cst_5 = arith.constant 5.000000e-01 : f32
    %6 = vector.broadcast %cst_5 : f32 to vector<128x64xf32>
    %7 = arith.mulf %6, %5 : vector<128x64xf32>
    %cst_6 = arith.constant 0.707106769 : f32
    %8 = vector.broadcast %cst_6 : f32 to vector<128x64xf32>
    %9 = arith.mulf %5, %8 : vector<128x64xf32>
    %10 = math.erf %9 : vector<128x64xf32>
    %cst_7 = arith.constant 1.000000e+00 : f32
    %11 = vector.broadcast %cst_7 : f32 to vector<128x64xf32>
    %12 = arith.addf %11, %10 : vector<128x64xf32>
    %13 = arith.mulf %7, %12 : vector<128x64xf32>
    %c0_8 = arith.constant 0 : index
    %c0_9 = arith.constant 0 : index
    %14 = vector.load %arg4[%c0_8, %c0_9] : memref<64x128xf32, #tpu.memory_space<vmem>>, vector<64x128xf32>
    %cst_10 = arith.constant dense<0.000000e+00> : vector<128x128xf32>
    %15 = tpu.matmul %13, %14, %cst_10 {dimension_numbers = #tpu.dot_dimension_numbers<[1], [0], [0], [1], [0, 0, 1, 1], [], []>} : vector<128x64xf32>, vector<64x128xf32>, vector<128x128xf32> -> vector<128x128xf32>
    %c0_11 = arith.constant 0 : index
    %c0_12 = arith.constant 0 : index
    %16 = vector.load %arg5[%c0_11, %c0_12] : memref<1x128xf32, #tpu.memory_space<vmem>>, vector<1x128xf32>
    %17 = vector.broadcast %16 : vector<1x128xf32> to vector<128x128xf32>
    %18 = arith.addf %15, %17 : vector<128x128xf32>
    %c0_13 = arith.constant 0 : index
    %c0_14 = arith.constant 0 : index
    %19 = vector.load %arg6[%c0_13, %c0_14] : memref<128x128xf32, #tpu.memory_space<vmem>>, vector<128x128xf32>
    tpu.vector_store %arg6[%c0_13, %c0_14], %18 {strides = array<i32>} : memref<128x128xf32, #tpu.memory_space<vmem>>, vector<128x128xf32>,
    return
  }
  func.func @transform_0(%arg0: i32) -> (i32, i32) {
    %c0_i32 = arith.constant 0 : i32
    %c0_i32_0 = arith.constant 0 : i32
    return %arg0, %c0_i32 : i32, i32
  }
  func.func @transform_1(%arg0: i32) -> (i32, i32) {
    %c0_i32 = arith.constant 0 : i32
    %c0_i32_0 = arith.constant 0 : i32
    %c0_i32_1 = arith.constant 0 : i32
    return %c0_i32, %c0_i32_0 : i32, i32
  }
  func.func @transform_2(%arg0: i32) -> (i32, i32) {
    %c0_i32 = arith.constant 0 : i32
    %c0_i32_0 = arith.constant 0 : i32
    %c0_i32_1 = arith.constant 0 : i32
    return %c0_i32, %c0_i32_0 : i32, i32
  }
  func.func @transform_3(%arg0: i32) -> (i32, i32) {
    %c0_i32 = arith.constant 0 : i32
    %c0_i32_0 = arith.constant 0 : i32
    %c0_i32_1 = arith.constant 0 : i32
    return %c0_i32, %c0_i32_0 : i32, i32
  }
  func.func @transform_4(%arg0: i32) -> (i32, i32) {
    %c0_i32 = arith.constant 0 : i32
    %c0_i32_0 = arith.constant 0 : i32
    %c0_i32_1 = arith.constant 0 : i32
    return %c0_i32, %c0_i32_0 : i32, i32
  }
  func.func @transform_5(%arg0: i32) -> (i32, i32) {
    %c0_i32 = arith.constant 0 : i32
    %c0_i32_0 = arith.constant 0 : i32
    return %arg0, %c0_i32 : i32, i32
  }
}

</mosaic_0001>

<bundles_post_ra>
// kernel: tpu_custom_call.1
= control target key start
LH: loop header
LB: loop body
LE: loop exit
PB: predicated region body
PF: predicated region fallthrough
CT: control target
= control target key end

     0   :  { %10 = vsyncpa [#allocation3], 0  ;;  %s1433_s0 = inlined_call_operand.vmem [shape: f32[256,32], index: 0, kind: input, shape index: {}]   ;;  %s1434_s1 = inlined_call_operand.vmem [shape: f32[32,64], index: 1, kind: input, shape index: {}]   ;;  %s1435_s2 = inlined_call_operand.vmem [shape: f32[1,64], index: 2, kind: input, shape index: {}]   ;;  %s1436_s3 = inlined_call_operand.vmem [shape: f32[64,128], index: 3, kind: input, shape index: {}]   ;;  %s1437_s4 = inlined_call_operand.vmem [shape: f32[1,128], index: 4, kind: input, shape index: {}]   ;;  %s1438_s5 = inlined_call_operand.hbm [shape: f32[256,128], index: 5, kind: output, shape index: {}]  }
   0x1   :  { %12 = vsyncpa [#allocation3 + $0x1], 0  ;;  %s1175_s18 = smov 0   ;;  %s1177_s19 = smov 0  }
   0x2   :  { %s1179_s20 = smov 0   ;;  %s1181_s21 = smov 0  }
   0x3 LB: > { %s1196_s22 = sadd.s32 4294967295, %s1140_s21   ;;  %s828_s23 = sadd.s32 4294967294, %s1140_s21   ;;  %s1140_s21 = sphi %s1181_s21, %s1444_s21   ;;  %s1136_s20 = sphi %s1179_s20, %s1443_s20   ;;  %s1132_s19 = sphi %s1177_s19, %s1442_s19   ;;  %s1128_s18 = sphi %s1175_s18, %s1441_s18  }
   0x4   : > { %s1200_s24 = sadd.s32 1, %s1140_s21   ;;  %s135_s25 = sadd.s32 1, %s1136_s20 }
   0x5   : > { %s132_s26 = ssub.s32 %s1140_s21, %s1200_s24  ;;  %p145_p0 = scmp.ne.s32.totalorder %s1136_s20, %s1132_s19 }
   0x6   : > { %p133_p1 = scmp.eq.s32.totalorder %s132_s26, 0  ;;  %p146_p2 = scmp.eq.s32.totalorder %s1196_s22, 1 }
   0x7   : > { %p151_p3 = scmp.ne.s32.totalorder %s1132_s19, %s1128_s18  ;;  %p152_p4 = scmp.eq.s32.totalorder %s828_s23, 1 }
   0x8   : > { %s1211_s27 = scalar_select %p133_p1, %s1136_s20, %s135_s25  }
   0x9   : > { %p1213_p5 = por %p146_p2, %p145_p0  ;;  %p1217_p6 = por %p152_p4, %p151_p3 }
   0xa   : > { %p831_p7 = scmp.ge.s32.totalorder %s1140_s21, 1  ;;  %p191_p8 = scmp.lt.s32.totalorder %s1140_s21, 3 }
   0xc   : > { %p192_p9 = pnand %p831_p7, %p191_p8 }
   0xd   : > { %s833_s9 = sshll.u32 (!%p192_p9), %s1196_s22, 4  ;;  %s216_s26 = sand.u32 (!%p192_p9), 1, %s1132_s19  }
   0xe   : > { %195 = sbr.rel (%p192_p9) target bundleno = 485 (0x1e5), region = 40  ;;  %p220_p10 = scmp.lt.s32.totalorder (!%p192_p9), %s833_s9, 31 }
   0xf   : > { %s832_s30 = sshll.u32 (!%p192_p9), %s216_s26, 7  ;;  %s1142_s15 = smov (!%p192_p9), [#allocation2]  }
  0x10   : > { %s1364_s8 = scalar_lea.vmem (!%p192_p9), [#allocation2], %s832_s30  ;;  %s1084_s16 = sshll.u32 (!%p192_p9), %s1142_s15, 4  ;;  %s1085_s16 = int_to_ptr.vmem [resolvable:$false] %s1084_s16 }
  0x11   : > { %s766_s10 = sshll.u32 (!%p192_p9), %s1364_s8, 4  ;;  %s1387_s10 = int_to_ptr.vmem [resolvable:$true] %s766_s10 }
  0x12   : > { %p1087_p0 = scmp.lt.s32.totalorder (!%p192_p9), %s1387_s10, %s1085_s16 }
  0x13   : > { %v245_v0 = vld [vmem:[%s1434_s1 + $0x18] sm:$0xff]  ;;  %v244_v1 = vld [vmem:[%s1434_s1 + $0x10] sm:$0xff]  ;;  %v243_v2 = vld [vmem:[%s1434_s1 + $0x8] sm:$0xff]  ;;  %s1446_s9 = smov (!%p220_p10, %s833_s9), 31  ;;  %vm253_vm0 = vcmask 261120   ;;  %vm542_vm1 = vcmask 523264  }
  0x14   : > { %919 = vmatprep.subr.mxu0 %v245_v0  ;;  %v242_v3 = vld [vmem:[%s1434_s1] sm:$0xff]  ;;  %s834_s14 = sshll.u32 %s1446_s9, 3  ;;  %v534_v20 = vld [vmem:[%s1436_s3 + $0x38] sm:$0xff]  ;;  %v533_v21 = vld [vmem:[%s1436_s3 + $0x30] sm:$0xff]  ;;  %s874_s9 = sshll.u32 %s1196_s22, 11 }
  0x15   : > { %920 = vmatpush3.msra.mxu0 %v245_v0  ;;  %s1239_s17 = scalar_lea.vmem %s1433_s0, %s834_s14  ;;  %991 = vmatprep.subr.mxu1 %v534_v20  ;;  %v532_v22 = vld [vmem:[%s1436_s3 + $0x28] sm:$0xff]  ;;  %v531_v23 = vld [vmem:[%s1436_s3 + $0x20] sm:$0xff]  ;;  %v530_v24 = vld [vmem:[%s1436_s3 + $0x18] sm:$0xff]  ;;  %s1385_s13 = scalar_lea.hbm %s1438_s5, %s874_s9 }
  0x16   : > { %921 = vmatprep.subr.mxu0 %v244_v1  ;;  %v226_v4 = vld [vmem:[%s1239_s17] sm:$0xff]  ;;  %v227_v5 = vld [vmem:[%s1239_s17 + $0x8] sm:$0xff]  ;;  %v228_v6 = vld [vmem:[%s1239_s17 + $0x10] sm:$0xff]  ;;  %999 = vmatpush3.msra.mxu1 %v534_v20  ;;  %s1393_s22 = scalar_lea.sflag [#allocation3], %s216_s26  ;;  %s1080_s14 = scalar_lea.vmem %s1387_s10, 2048 }
  0x17   : > { %922 = vmatpush3.msra.mxu0 %v244_v1  ;;  %927 = vmatprep.mubr.msk.f32.mxu0 %vm253_vm0, %v226_v4  ;;  %v229_v7 = vld [vmem:[%s1239_s17 + $0x18] sm:$0xff]  ;;  %v230_v8 = vld [vmem:[%s1239_s17 + $0x20] sm:$0xff]  ;;  %v231_v9 = vld [vmem:[%s1239_s17 + $0x28] sm:$0xff]  ;;  %p1081_p11 = scmp.ne.s32.totalorder %s1387_s10, %s1080_s14 }
  0x18   : > { %923 = vmatprep.subr.mxu0 %v243_v2  ;;  %v232_v10 = vld [vmem:[%s1239_s17 + $0x30] sm:$0xff]  ;;  %v233_v11 = vld [vmem:[%s1239_s17 + $0x38] sm:$0xff]  ;;  %v234_v12 = vld [vmem:[%s1239_s17 + $0x40] sm:$0xff]  ;;  %992 = vmatprep.subr.mxu1 %v533_v21 }
  0x19   : > { %924 = vmatpush3.msra.mxu0 %v243_v2  ;;  %v235_v13 = vld [vmem:[%s1239_s17 + $0x48] sm:$0xff]  ;;  %v236_v14 = vld [vmem:[%s1239_s17 + $0x50] sm:$0xff]  ;;  %v237_v15 = vld [vmem:[%s1239_s17 + $0x58] sm:$0xff]  ;;  %1000 = vmatpush3.msra.mxu1 %v533_v21  ;;  %p1082_p12 = pnand %p1081_p11, %p1213_p5 }
  0x1a   : > { %925 = vmatprep.subr.mxu0 %v242_v3  ;;  %v238_v16 = vld [vmem:[%s1239_s17 + $0x60] sm:$0xff]  ;;  %v239_v17 = vld [vmem:[%s1239_s17 + $0x68] sm:$0xff]  ;;  %v240_v18 = vld [vmem:[%s1239_s17 + $0x70] sm:$0xff]  ;;  %993 = vmatprep.subr.mxu1 %v532_v22 }
  0x1b   : > { %926 = vmatpush3.msra.mxu0 %v242_v3  ;;  %v241_v19 = vld [vmem:[%s1239_s17 + $0x78] sm:$0xff]  ;;  %1001 = vmatpush3.msra.mxu1 %v532_v22  ;;  %v529_v25 = vld [vmem:[%s1436_s3 + $0x10] sm:$0xff]  ;;  %v528_v26 = vld [vmem:[%s1436_s3 + $0x8] sm:$0xff]  ;;  %p1083_p13 = pneg %p1082_p12  ;;  %s1086_s17 = scalar_lea.vmem %s1085_s16, 4096 }
  0x1c   : > { %928 = vmatmul.mubr.msk.f32.vlgmr.msra.gmra.mxu0 %vm253_vm0, %v227_v5  ;;  %951 = vmatprep.subr.mxu0 %v534_v20  ;;  %v527_v27 = vld [vmem:[%s1436_s3] sm:$0xff]  ;;  %p1088_p1 = scmp.lt.s32.totalorder %s1086_s17, %s1080_s14 }
  0x1d   : > { %930 = vmatprep.mubr.msk.f32.mxu0 %vm253_vm0, %v228_v6  ;;  %952 = vmatpush3.msra.mxu0 %v534_v20  ;;  %v1300_v28 = vld [vmem:[%s1435_s2] ss:$0 sm:$0xff] }
  0x1e   : > { %953 = vmatprep.subr.mxu0 %v533_v21  ;;  %994 = vmatprep.subr.mxu1 %v531_v23  ;;  %p1089_p2 = por %p1088_p1, %p1087_p0 }
  0x1f   : > { %954 = vmatpush3.msra.mxu0 %v533_v21  ;;  %1002 = vmatpush3.msra.mxu1 %v531_v23 }
  0x20   : > { %931 = vmatmul.mubr.msk.f32.gmra.mxu0 %vm253_vm0, %v229_v7  ;;  %955 = vmatprep.subr.mxu0 %v532_v22  ;;  %p1090_p3 = pnand %p1089_p2, %p1083_p13 }
  0x21   : > { %933 = vmatprep.mubr.msk.f32.mxu0 %vm253_vm0, %v230_v8  ;;  %956 = vmatpush3.msra.mxu0 %v532_v22 }
  0x22   : > { %957 = vmatprep.subr.mxu0 %v531_v23  ;;  %995 = vmatprep.subr.mxu1 %v530_v24 }
  0x23   : > { %958 = vmatpush3.msra.mxu0 %v531_v23  ;;  %1003 = vmatpush3.msra.mxu1 %v530_v24 }
  0x24   : > { %934 = vmatmul.mubr.msk.f32.gmra.mxu0 %vm253_vm0, %v231_v9  ;;  %959 = vmatprep.subr.mxu0 %v530_v24 }
  0x25   : > { %936 = vmatprep.mubr.msk.f32.mxu0 %vm253_vm0, %v232_v10  ;;  %960 = vmatpush3.msra.mxu0 %v530_v24 }
  0x26   : > { %961 = vmatprep.subr.mxu0 %v529_v25  ;;  %996 = vmatprep.subr.mxu1 %v529_v25 }
  0x27   : > { %962 = vmatpush3.msra.mxu0 %v529_v25  ;;  %1004 = vmatpush3.msra.mxu1 %v529_v25 }
  0x28   : > { %937 = vmatmul.mubr.msk.f32.gmra.mxu0 %vm253_vm0, %v233_v11  ;;  %963 = vmatprep.subr.mxu0 %v528_v26 }
  0x29   : > { %939 = vmatprep.mubr.msk.f32.mxu0 %vm253_vm0, %v234_v12  ;;  %997 = vmatprep.subr.mxu1 %v528_v26 }
  0x2a   : > { %964 = vmatpush3.msra.mxu0 %v528_v26  ;;  %1005 = vmatpush3.msra.mxu1 %v528_v26 }
  0x2b   : > { %965 = vmatprep.subr.mxu0 %v527_v27  ;;  %998 = vmatprep.subr.mxu1 %v527_v27 }
  0x2c   : > { %940 = vmatmul.mubr.msk.f32.gmra.mxu0 %vm253_vm0, %v235_v13  ;;  %1006 = vmatpush3.msra.mxu1 %v527_v27 }
  0x2d   : > { %942 = vmatprep.mubr.msk.f32.mxu0 %vm253_vm0, %v236_v14  ;;  %966 = vmatpush3.msra.mxu0 %v527_v27 }
  0x30   : > { %943 = vmatmul.mubr.msk.f32.gmra.mxu0 %vm253_vm0, %v237_v15 }
  0x31   : > { %945 = vmatprep.mubr.msk.f32.mxu0 %vm253_vm0, %v238_v16 }
  0x34   : > { %946 = vmatmul.mubr.msk.f32.gmra.mxu0 %vm253_vm0, %v239_v17 }
  0x35   : > { %948 = vmatprep.mubr.msk.f32.mxu0 %vm253_vm0, %v240_v18 }
  0x38   : > { %949 = vmatmul.mubr.msk.f32.gmra.mxu0 %vm253_vm0, %v241_v19 }
  0xdc   : > { %v929_v29 = vpop.f32.mrf.mxu0 }
  0xdd   : > { %v374_v30 = vadd.f32 %v929_v29, %v1300_v28 }
  0xde   : > { %v368_v31 = vpop.f32.mrf.mxu0 }
  0xdf   : > { %v464_v32 = vmul.f32 0.70710677, %v374_v30  ;;  %v369_v33 = vadd.f32 %v1300_v28, %v368_v31  ;;  %v448_v2 = vmul.f32 0.5, %v374_v30 }
  0xe0   : > { %v932_v34 = vpop.f32.mrf.mxu0 }
  0xe1   : > { %1048 = verf.f32 %v464_v32  ;;  %v463_v35 = vmul.f32 0.70710677, %v369_v33  ;;  %v384_v36 = vadd.f32 %v932_v34, %v1300_v28  ;;  %v447_v62 = vmul.f32 0.5, %v369_v33 }
  0xe2   : > { %v378_v37 = vpop.f32.mrf.mxu0 }
  0xe3   : > { %1050 = verf.f32 %v463_v35  ;;  %v466_v38 = vmul.f32 0.70710677, %v384_v36  ;;  %v379_v39 = vadd.f32 %v1300_v28, %v378_v37  ;;  %v450_v18 = vmul.f32 0.5, %v384_v36 }
  0xe4   : > { %v935_v40 = vpop.f32.mrf.mxu0 }
  0xe5   : > { %1052 = verf.f32 %v466_v38  ;;  %v465_v41 = vmul.f32 0.70710677, %v379_v39  ;;  %v1307_v42 = vadd.f32 %v935_v40, %v1300_v28  ;;  %v449_v15 = vmul.f32 0.5, %v379_v39 }
  0xe6   : > { %v388_v43 = vpop.f32.mrf.mxu0 }
  0xe7   : > { %1054 = verf.f32 %v465_v41  ;;  %v468_v44 = vmul.f32 0.70710677, %v1307_v42  ;;  %v389_v45 = vadd.f32 %v1300_v28, %v388_v43  ;;  %v452_v33 = vmul.f32 0.5, %v1307_v42 }
  0xe8   : > { %v938_v46 = vpop.f32.mrf.mxu0 }
  0xe9   : > { %1056 = verf.f32 %v468_v44  ;;  %v467_v47 = vmul.f32 0.70710677, %v389_v45  ;;  %v1312_v48 = vadd.f32 %v938_v46, %v1300_v28  ;;  %v451_v22 = vmul.f32 0.5, %v389_v45 }
  0xea   : > { %v398_v49 = vpop.f32.mrf.mxu0 }
  0xeb   : > { %1058 = verf.f32 %v467_v47  ;;  %v470_v50 = vmul.f32 0.70710677, %v1312_v48  ;;  %v399_v51 = vadd.f32 %v1300_v28, %v398_v49  ;;  %v454_v45 = vmul.f32 0.5, %v1312_v48 }
  0xec   : > { %v941_v52 = vpop.f32.mrf.mxu0 }
  0xed   : > { %1060 = verf.f32 %v470_v50  ;;  %v469_v53 = vmul.f32 0.70710677, %v399_v51  ;;  %v1317_v54 = vadd.f32 %v941_v52, %v1300_v28  ;;  %v453_v37 = vmul.f32 0.5, %v399_v51 }
  0xee   : > { %v1049_v55 = vpop.eup %1048  ;;  %v408_v56 = vpop.f32.mrf.mxu0 }
  0xef   : > { %1062 = verf.f32 %v469_v53  ;;  %v472_v57 = vmul.f32 0.70710677, %v1317_v54  ;;  %v496_v59 = vadd.f32 1.0, %v1049_v55  ;;  %v1321_v60 = vadd.f32 %v1300_v28, %v408_v56 }
  0xf0   : > { %v1051_v58 = vpop.eup %1050  ;;  %v944_v61 = vpop.f32.mrf.mxu0  ;;  %v456_v52 = vmul.f32 0.5, %v1317_v54 }
  0xf1   : > { %v495_v63 = vadd.f32 1.0, %v1051_v58  ;;  %1064 = verf.f32 %v472_v57  ;;  %v1324_v0 = vadd.f32 %v944_v61, %v1300_v28  ;;  %v471_v3 = vmul.f32 0.70710677, %v1321_v60 }
  0xf2   : > { %v1053_v1 = vpop.eup %1052  ;;  %v418_v4 = vpop.f32.mrf.mxu0  ;;  %v512_v8 = vmul.f32 %v496_v59, %v448_v2  ;;  %v455_v50 = vmul.f32 0.5, %v1321_v60 }
  0xf3   : > { %v511_v5 = vmul.f32 %v495_v63, %v447_v62  ;;  %v474_v6 = vmul.f32 0.70710677, %v1324_v0  ;;  %1066 = verf.f32 %v471_v3  ;;  %v419_v9 = vadd.f32 %v1300_v28, %v418_v4 }
  0xf4   : > { %v1055_v7 = vpop.eup %1054  ;;  %v947_v10 = vpop.f32.mrf.mxu0  ;;  %v498_v11 = vadd.f32 1.0, %v1053_v1  ;;  %v458_v61 = vmul.f32 0.5, %v1324_v0 }
  0xf5   : > { %1068 = verf.f32 %v474_v6  ;;  %v1330_v12 = vadd.f32 %v947_v10, %v1300_v28  ;;  %967 = vmatprep.mubr.msk.f32.mxu0 %vm542_vm1, %v511_v5  ;;  %v497_v13 = vadd.f32 1.0, %v1055_v7  ;;  %v473_v16 = vmul.f32 0.70710677, %v419_v9 }
  0xf6   : > { %v1057_v14 = vpop.eup %1056  ;;  %v428_v17 = vpop.f32.mrf.mxu0  ;;  %968 = vmatmul.mubr.msk.f32.vlgmr.msra.gmra.mxu0 %vm542_vm1, %v512_v8  ;;  %v514_v25 = vmul.f32 %v498_v11, %v450_v18  ;;  %v457_v58 = vmul.f32 0.5, %v419_v9 }
  0xf7   : > { %v476_v19 = vmul.f32 0.70710677, %v1330_v12  ;;  %v429_v20 = vadd.f32 %v1300_v28, %v428_v17  ;;  %1070 = verf.f32 %v473_v16  ;;  %v513_v24 = vmul.f32 %v497_v13, %v449_v15 }
  0xf8   : > { %v1059_v21 = vpop.eup %1058  ;;  %v950_v23 = vpop.f32.mrf.mxu0  ;;  %v500_v26 = vadd.f32 1.0, %v1057_v14  ;;  %v460_v4 = vmul.f32 0.5, %v1330_v12  ;;  %v852_v12 = vld [vmem:[%s1437_s4] ss:$0 sm:$0xff] }
  0xf9   : > { %v499_v27 = vadd.f32 1.0, %v1059_v21  ;;  %1072 = verf.f32 %v476_v19  ;;  %v475_v30 = vmul.f32 0.70710677, %v429_v20  ;;  %v444_v31 = vadd.f32 %v950_v23, %v1300_v28  ;;  %970 = vmatprep.mubr.msk.f32.mxu1 %vm542_vm1, %v513_v24 }
  0xfa   : > { %v1061_v29 = vpop.eup %1060  ;;  %v438_v32 = vpop.f32.mrf.mxu0  ;;  %971 = vmatmul.mubr.msk.f32.vlgmr.msra.gmra.mxu1 %vm542_vm1, %v514_v25  ;;  %v516_v39 = vmul.f32 %v500_v26, %v452_v33  ;;  %v459_v54 = vmul.f32 0.5, %v429_v20 }
  0xfb   : > { %v515_v34 = vmul.f32 %v499_v27, %v451_v22  ;;  %v439_v35 = vadd.f32 %v1300_v28, %v438_v32  ;;  %1074 = verf.f32 %v475_v30  ;;  %v478_v38 = vmul.f32 0.70710677, %v444_v31 }
  0xfc   : > { %v1063_v36 = vpop.eup %1062  ;;  %v502_v40 = vadd.f32 1.0, %v1061_v29  ;;  %v462_v10 = vmul.f32 0.5, %v444_v31 }
  0xfd   : > { %v501_v41 = vadd.f32 1.0, %v1063_v36  ;;  %v477_v43 = vmul.f32 0.70710677, %v439_v35  ;;  %973 = vmatprep.mubr.msk.f32.mxu1 %vm542_vm1, %v515_v34  ;;  %1076 = verf.f32 %v478_v38  ;;  %v461_v8 = vmul.f32 0.5, %v439_v35 }
  0xfe   : > { %v1065_v44 = vpop.eup %1064  ;;  %974 = vmatmul.mubr.msk.f32.gmra.mxu1 %vm542_vm1, %v516_v39  ;;  %v518_v46 = vmul.f32 %v502_v40, %v454_v45 }
  0xff   : > { %v517_v42 = vmul.f32 %v501_v41, %v453_v37  ;;  %1078 = verf.f32 %v477_v43  ;;  %v504_v47 = vadd.f32 1.0, %v1065_v44 }
 0x100   : > { %v1067_v28 = vpop.eup %1066 }
 0x101   : > { %976 = vmatprep.mubr.msk.f32.mxu1 %vm542_vm1, %v517_v42  ;;  %v503_v51 = vadd.f32 1.0, %v1067_v28  ;;  %v520_v48 = vmul.f32 %v504_v47, %v456_v52 }
 0x102   : > { %v1069_v49 = vpop.eup %1068  ;;  %977 = vmatmul.mubr.msk.f32.gmra.mxu1 %vm542_vm1, %v518_v46 }
 0x103   : > { %v519_v53 = vmul.f32 %v503_v51, %v455_v50  ;;  %v506_v56 = vadd.f32 1.0, %v1069_v49 }
 0x104   : > { %v1071_v55 = vpop.eup %1070 }
 0x105   : > { %v505_v59 = vadd.f32 1.0, %v1071_v55  ;;  %979 = vmatprep.mubr.msk.f32.mxu1 %vm542_vm1, %v519_v53  ;;  %v522_v63 = vmul.f32 %v506_v56, %v458_v61 }
 0x106   : > { %v1073_v57 = vpop.eup %1072  ;;  %980 = vmatmul.mubr.msk.f32.gmra.mxu1 %vm542_vm1, %v520_v48 }
 0x107   : > { %v521_v62 = vmul.f32 %v505_v59, %v457_v58  ;;  %v508_v1 = vadd.f32 1.0, %v1073_v57 }
 0x108   : > { %v1075_v60 = vpop.eup %1074 }
 0x109   : > { %v507_v2 = vadd.f32 1.0, %v1075_v60  ;;  %982 = vmatprep.mubr.msk.f32.mxu1 %vm542_vm1, %v521_v62  ;;  %v524_v0 = vmul.f32 %v508_v1, %v460_v4 }
 0x10a   : > { %v1077_v3 = vpop.eup %1076  ;;  %983 = vmatmul.mubr.msk.f32.gmra.mxu1 %vm542_vm1, %v522_v63 }
 0x10b   : > { %v523_v6 = vmul.f32 %v507_v2, %v459_v54  ;;  %v510_v7 = vadd.f32 1.0, %v1077_v3 }
 0x10c   : > { %v1079_v5 = vpop.eup %1078 }
 0x10d   : > { %v509_v9 = vadd.f32 1.0, %v1079_v5  ;;  %985 = vmatprep.mubr.msk.f32.mxu1 %vm542_vm1, %v523_v6  ;;  %v526_v13 = vmul.f32 %v510_v7, %v462_v10 }
 0x10e   : > { %986 = vmatmul.mubr.msk.f32.gmra.mxu1 %vm542_vm1, %v524_v0 }
 0x10f   : > { %v525_v11 = vmul.f32 %v509_v9, %v461_v8 }
 0x111   : > { %988 = vmatprep.mubr.msk.f32.mxu1 %vm542_vm1, %v525_v11 }
 0x112   : > { %989 = vmatmul.mubr.msk.f32.gmra.mxu1 %vm542_vm1, %v526_v13 }
 0x1b6   : > { %v969_v14 = vpop.f32.mrf.mxu0 }
 0x1b7   : > { %v663_v15 = vadd.f32 %v969_v14, %v852_v12 }
 0x1b8   : > { %v657_v16 = vpop.f32.mrf.mxu0 }
 0x1b9   : > { %737 = vst [vmem:[%s1364_s8 + $0x8] sm:$0xff] %v663_v15  ;;  %v658_v17 = vadd.f32 %v852_v12, %v657_v16 }
 0x1ba   : > { %v972_v18 = vpop.f32.mrf.mxu1 }
 0x1bb   : > { %736 = vst [vmem:[%s1364_s8] sm:$0xff] %v658_v17  ;;  %v673_v19 = vadd.f32 %v972_v18, %v852_v12 }
 0x1bc   : > { %v667_v20 = vpop.f32.mrf.mxu1 }
 0x1bd   : > { %739 = vst [vmem:[%s1364_s8 + $0x18] sm:$0xff] %v673_v19  ;;  %v668_v21 = vadd.f32 %v852_v12, %v667_v20 }
 0x1be   : > { %v975_v22 = vpop.f32.mrf.mxu1 }
 0x1bf   : > { %738 = vst [vmem:[%s1364_s8 + $0x10] sm:$0xff] %v668_v21  ;;  %v683_v23 = vadd.f32 %v975_v22, %v852_v12 }
 0x1c0   : > { %v677_v24 = vpop.f32.mrf.mxu1 }
 0x1c1   : > { %741 = vst [vmem:[%s1364_s8 + $0x28] sm:$0xff] %v683_v23  ;;  %v678_v25 = vadd.f32 %v852_v12, %v677_v24 }
 0x1c2   : > { %v978_v26 = vpop.f32.mrf.mxu1 }
 0x1c3   : > { %740 = vst [vmem:[%s1364_s8 + $0x20] sm:$0xff] %v678_v25  ;;  %v693_v27 = vadd.f32 %v978_v26, %v852_v12 }
 0x1c4   : > { %v687_v29 = vpop.f32.mrf.mxu1 }
 0x1c5   : > { %743 = vst [vmem:[%s1364_s8 + $0x38] sm:$0xff] %v693_v27  ;;  %v688_v30 = vadd.f32 %v852_v12, %v687_v29 }
 0x1c6   : > { %v981_v31 = vpop.f32.mrf.mxu1 }
 0x1c7   : > { %742 = vst [vmem:[%s1364_s8 + $0x30] sm:$0xff] %v688_v30  ;;  %v703_v32 = vadd.f32 %v981_v31, %v852_v12 }
 0x1c8   : > { %v697_v33 = vpop.f32.mrf.mxu1 }
 0x1c9   : > { %745 = vst [vmem:[%s1364_s8 + $0x48] sm:$0xff] %v703_v32  ;;  %v698_v34 = vadd.f32 %v852_v12, %v697_v33 }
 0x1ca   : > { %v984_v35 = vpop.f32.mrf.mxu1 }
 0x1cb   : > { %744 = vst [vmem:[%s1364_s8 + $0x40] sm:$0xff] %v698_v34  ;;  %v713_v36 = vadd.f32 %v984_v35, %v852_v12 }
 0x1cc   : > { %v707_v37 = vpop.f32.mrf.mxu1 }
 0x1cd   : > { %747 = vst [vmem:[%s1364_s8 + $0x58] sm:$0xff] %v713_v36  ;;  %v708_v38 = vadd.f32 %v852_v12, %v707_v37 }
 0x1ce   : > { %v987_v39 = vpop.f32.mrf.mxu1 }
 0x1cf   : > { %746 = vst [vmem:[%s1364_s8 + $0x50] sm:$0xff] %v708_v38  ;;  %v723_v40 = vadd.f32 %v987_v39, %v852_v12 }
 0x1d0   : > { %v717_v41 = vpop.f32.mrf.mxu1 }
 0x1d1   : > { %749 = vst [vmem:[%s1364_s8 + $0x68] sm:$0xff] %v723_v40  ;;  %v718_v43 = vadd.f32 %v852_v12, %v717_v41 }
 0x1d2   : > { %v990_v44 = vpop.f32.mrf.mxu1 }
 0x1d3   : > { %748 = vst [vmem:[%s1364_s8 + $0x60] sm:$0xff] %v718_v43  ;;  %v733_v45 = vadd.f32 %v990_v44, %v852_v12 }
 0x1d4   : > { %v727_v42 = vpop.f32.mrf.mxu1 }
 0x1d5   : > { %751 = vst [vmem:[%s1364_s8 + $0x78] sm:$0xff] %v733_v45  ;;  %v728_v28 = vadd.f32 %v852_v12, %v727_v42 }
 0x1d7   : > { %750 = vst [vmem:[%s1364_s8 + $0x70] sm:$0xff] %v728_v28 }
 0x1d8   : > { %1093 = shalt.err (!%p1090_p3)
}
 0x1d9   : > { %s1094_s23 = scalar_lea.hbm %s1385_s13, 2048  ;;  %s1098_s30 = scalar_lea.hbm %s1438_s5, 4096 }
 0x1da   : > { %p1095_p4 = scmp.ne.s32.totalorder %s1385_s13, %s1094_s23  ;;  %p1099_p9 = scmp.lt.s32.totalorder %s1385_s13, %s1438_s5 }
 0x1db   : > { %p1100_p10 = scmp.lt.s32.totalorder %s1098_s30, %s1094_s23 }
 0x1dc   : > { %p1096_p7 = pnand %p1095_p4, %p1213_p5 }
 0x1dd   : > { %p1101_p11 = por %p1100_p10, %p1099_p9 }
 0x1de   : > { %p1097_p8 = pneg %p1096_p7 }
 0x1e0   : > { %p1102_p12 = pnand %p1101_p11, %p1097_p8 }
 0x1e2   : > { %1105 = shalt.err (!%p1102_p12)
}
 0x1e3   : > { %s1143_s8 = smov 128   ;;  %s1144_s9 = smov 8  }
 0x1e4   : > { %1007 = dma.vmem_to_hbm [thread:$0]  (%p1213_p5), %s1387_s10, 2048, %s1385_s13, %s1393_s22, %s1143_s8, %s1143_s8, %s1144_s9  }
 0x1e5 PF: > { %p1013_p13 = scmp.ge.s32.totalorder %s1140_s21, 2  ;;  %s781_s11 = sand.u32 1, %s1128_s18  }
 0x1e6   : > { %s782_s12 = scalar_lea.sflag [#allocation3], %s781_s11 }
 0x1e7   : > { %p1010_p0 = pnand %p1013_p13, %p1217_p6 }
 0x1e9   : > { %p1011_p1 = pneg %p1010_p0 }
 0x1eb   : > { %1123 = dma.done.wait (%p1011_p1), %s782_s12, 2048  }
 0x1ec   : > { %1125 = vsyncadd (%p1011_p1), %s782_s12, 4294965248  ;;  %p15_p2 = scmp.ge.s32.totalorder %s1200_s24, 4   ;;  %s1441_s18 = smov %s1132_s19 }
 0x1ed   : > { %s1442_s19 = smov %s1136_s20  ;;  %s1443_s20 = smov %s1211_s27 }
 0x1ee   : > { %s1444_s21 = smov %s1200_s24  ;;  %17 = sbr.rel (!%p15_p2) target bundleno = 3 (0x3), region = 75 }
 0x1f3   :  { %787 = vsyncpa [#allocation3], 1 }
 0x1f4   :  { %789 = vsyncpa [#allocation3 + $0x1], 1 }

</bundles_post_ra>
